<compile_context>
chip_gen: v7x
topology: tpu7x:2x2x1
jax: 0.10.0
libtpu: 0.0.40
codegen_flags: <defaults>
</compile_context>

<pallas_src>
import math
import functools

import jax
import jax.numpy as jnp
from jax.experimental import pallas as pl
from jax.experimental.pallas import tpu as pltpu


def _pos_embed_sine_kernel(rows_ref, out_ref, *, npf, cb, temperature,
                           straddle_free):
    """Writes one (cb, hw_tile) block of the sinusoidal embedding.

    Global channel c semantics (matching the torch forward):
      c <  npf : y-embedding, within-half index i = c
      c >= npf : x-embedding, within-half index i = c - npf
    Within a half, channel i uses divisor dim_t[i] = T ** (2*(i//2)/npf);
    even i -> sin, odd i -> cos.  cos(v) is computed as sin(v + pi/2) so only
    one transcendental per output element is needed.
    """
    neg_log_t = -math.log(float(temperature))
    half_pi = 0.5 * math.pi

    c0 = pl.program_id(0) * cb
    c = c0 + jax.lax.broadcasted_iota(jnp.int32, (cb, 1), 0)

    y_row = rows_ref[0:1, :]                                # (1, hw_tile)
    x_row = rows_ref[1:2, :]                                # (1, hw_tile)

    if straddle_free:
        # Whole block lies entirely in the y half or the x half.
        is_x_block = c0 >= npf                              # scalar
        i = c - jnp.where(is_x_block, npf, 0)               # within-half idx
        expo = (i >> 1).astype(jnp.float32) * (2.0 / float(npf))
        inv_dim_t = jnp.exp(expo * neg_log_t)               # (cb, 1)
        phase = (i & 1).astype(jnp.float32) * half_pi       # (cb, 1)
        row = jnp.where(is_x_block, x_row, y_row)           # (1, hw_tile)
        # Full-size work: 1 mul + 1 add + 1 sin per element.
        val = row * inv_dim_t + phase
    else:
        # Fallback: block may straddle the y/x channel boundary.
        is_x = c >= npf
        i = jnp.where(is_x, c - npf, c)
        expo = (i >> 1).astype(jnp.float32) * (2.0 / float(npf))
        inv_dim_t = jnp.exp(expo * neg_log_t)
        phase = (i & 1).astype(jnp.float32) * half_pi
        wy = jnp.where(is_x, 0.0, inv_dim_t)
        wx = jnp.where(is_x, inv_dim_t, 0.0)
        # Full-size work: 2 muls + 2 adds + 1 sin per element.
        val = y_row * wy + x_row * wx + phase

    out_ref[...] = jnp.sin(val).astype(out_ref.dtype)


def _choose_blocks(C, npf, HW_pad, itemsize, cap_bytes):
    """Pick (cb, hw_tile, straddle_free) respecting TPU layout rules."""
    sub = max(8, 32 // itemsize)          # f32 -> 8, bf16 -> 16, i8 -> 32

    if npf % sub == 0:
        cb, straddle_free = npf, True     # cb divides npf -> no straddle
    elif C % sub == 0:
        cb, straddle_free = C, False      # full channel dim, straddles
    else:
        cb, straddle_free = C, (npf % C == 0)   # full dim always legal

    # Shrink cb (keeping it a multiple of `sub` and a divisor of npf / C)
    # until a single 128-lane column fits in the block byte cap.
    while cb % (2 * sub) == 0 and cb * 128 * itemsize > cap_bytes:
        cb //= 2

    # HW tile: multiple of 128 dividing HW_pad, block <= cap_bytes.
    hw_tile = HW_pad
    while (hw_tile > 128 and cb * hw_tile * itemsize > cap_bytes
           and hw_tile % 2 == 0 and (hw_tile // 2) % 128 == 0):
        hw_tile //= 2

    # Guarantee >= 2 grid blocks for v7x megacore when possible.
    if (C // cb) * (HW_pad // hw_tile) < 2 and hw_tile % 256 == 0:
        hw_tile //= 2

    return cb, hw_tile, straddle_free


def position_embedding_sine(x, num_pos_feats, temperature=10000,
                            normalize=True, scale=None,
                            out_dtype=jnp.float32):
    """Pallas equivalent of PositionEmbeddingSine.forward.

    x: (B, C_in, H, W) NCHW input — only its shape matters.
    Returns (B, num_pos_feats, H, W) positional embedding in `out_dtype`.
    """
    assert num_pos_feats % 2 == 0, "Expecting even model width"
    if scale is not None and normalize is False:
        raise ValueError("normalize should be True if scale is passed")
    if scale is None:
        scale = 2.0 * math.pi
    npf = num_pos_feats // 2

    B, _, H, W = x.shape
    C = num_pos_feats
    HW = H * W
    HW_pad = ((HW + 127) // 128) * 128          # lane-dense (unmasked vst)
    itemsize = jnp.dtype(out_dtype).itemsize

    cb, hw_tile, straddle_free = _choose_blocks(
        C, npf, HW_pad, itemsize, cap_bytes=8 << 20)
    grid = (C // cb, HW_pad // hw_tile)

    # Precompute the 1-based (normalized/scaled) coordinate rows on the host
    # side of the kernel: hoists //W, %W and the normalization out of every
    # grid step.  Tiny: (2, HW_pad) f32.
    yy = jnp.arange(1, H + 1, dtype=jnp.float32)
    xx = jnp.arange(1, W + 1, dtype=jnp.float32)
    if normalize:
        eps = 1e-6
        # Last row / col values are exactly H and W (1-based arange).
        yy = yy / (float(H) + eps) * scale
        xx = xx / (float(W) + eps) * scale
    rows = jnp.stack([jnp.repeat(yy, W), jnp.tile(xx, H)], axis=0)  # (2, HW)
    if HW_pad > HW:
        rows = jnp.pad(rows, ((0, 0), (0, HW_pad - HW)))

    kernel = functools.partial(
        _pos_embed_sine_kernel, npf=npf, cb=cb, temperature=temperature,
        straddle_free=straddle_free)

    pos_flat = pl.pallas_call(
        kernel,
        out_shape=jax.ShapeDtypeStruct((C, HW_pad), out_dtype),
        grid=grid,
        in_specs=[pl.BlockSpec((2, hw_tile), lambda j, t: (0, t))],
        out_specs=pl.BlockSpec((cb, hw_tile), lambda j, t: (j, t)),
        compiler_params=pltpu.CompilerParams(
            dimension_semantics=("parallel", "parallel"),
            vmem_limit_bytes=32 << 20),
    )(rows)

    pos = pos_flat[:, :HW].reshape(C, H, W)
    # TODO(synk): the torch module's `self.cache` host-side memoization is
    # Python state, not a compute op — intentionally not reproduced.
    # NOTE: the embedding is identical for every batch element; under jit the
    # consumer's add fuses this broadcast, avoiding B× extra HBM traffic.
    return jnp.broadcast_to(pos[None], (B, C, H, W))


def _reference_pos_embed(x, num_pos_feats, temperature=10000,
                         normalize=True, scale=None):
    """Pure-JAX mirror of the torch forward, for correctness checking."""
    if scale is None:
        scale = 2.0 * math.pi
    npf = num_pos_feats // 2
    B, _, H, W = x.shape
    y_embed = jnp.broadcast_to(
        jnp.arange(1, H + 1, dtype=jnp.float32)[None, :, None], (B, H, W))
    x_embed = jnp.broadcast_to(
        jnp.arange(1, W + 1, dtype=jnp.float32)[None, None, :], (B, H, W))
    if normalize:
        eps = 1e-6
        y_embed = y_embed / (y_embed[:, -1:, :] + eps) * scale
        x_embed = x_embed / (x_embed[:, :, -1:] + eps) * scale
    dim_t = jnp.arange(npf, dtype=jnp.float32)
    dim_t = temperature ** (2 * (dim_t // 2) / npf)
    pos_x = x_embed[:, :, :, None] / dim_t
    pos_y = y_embed[:, :, :, None] / dim_t
    pos_x = jnp.stack(
        (jnp.sin(pos_x[:, :, :, 0::2]), jnp.cos(pos_x[:, :, :, 1::2])),
        axis=4).reshape(B, H, W, -1)
    pos_y = jnp.stack(
        (jnp.sin(pos_y[:, :, :, 0::2]), jnp.cos(pos_y[:, :, :, 1::2])),
        axis=4).reshape(B, H, W, -1)
    pos = jnp.concatenate((pos_y, pos_x), axis=3).transpose(0, 3, 1, 2)
    return pos


if __name__ == "__main__":
    # Small shapes consistent with the module: batch=2, channels=4, spatial=16.
    key = jax.random.PRNGKey(0)
    B, C_in, H, W = 2, 4, 16, 16
    num_pos_feats = 32  # output channel count (module halves it internally)

    x = jax.random.normal(key, (B, C_in, H, W), dtype=jnp.float32)

    pos = position_embedding_sine(x, num_pos_feats)
    pos = jax.block_until_ready(pos)

    ref = _reference_pos_embed(x, num_pos_feats)
    assert pos.shape == (B, num_pos_feats, H, W), pos.shape
    assert jnp.allclose(pos, ref, atol=1e-5, rtol=1e-5), (
        float(jnp.max(jnp.abs(pos - ref))))

    print("KERNEL_OK")
</pallas_src>

<mosaic_0001>
module attributes {stable_mosaic.version = 11 : i64} {
  func.func @_pos_embed_sine_kernel(%arg0: i32, %arg1: i32, %arg2: memref<2x256xf32, #tpu.memory_space<vmem>>, %arg3: memref<16x256xf32, #tpu.memory_space<vmem>>) attributes {dimension_semantics = [#tpu.dimension_semantics<parallel>, #tpu.dimension_semantics<parallel>], iteration_bounds = array<i64: 2, 1>, scalar_prefetch = 0 : i64, scratch_operands = 0 : i64, tpu.core_type = #tpu.core_type<tc>, window_params = [{transform_indices = @transform_0, window_bounds = array<i64: 2, 256>}, {transform_indices = @transform_1, window_bounds = array<i64: 16, 256>}]} {
    %c16_i32 = arith.constant 16 : i32
    %0 = arith.muli %arg0, %c16_i32 : i32
    %1 = tpu.iota {dimensions = array<i32: 0>} : vector<16x1xi32>
    %2 = vector.broadcast %0 : i32 to vector<16x1xi32>
    %3 = arith.addi %2, %1 : vector<16x1xi32>
    %c0 = arith.constant 0 : index
    %c0_0 = arith.constant 0 : index
    %4 = vector.load %arg2[%c0, %c0_0] : memref<2x256xf32, #tpu.memory_space<vmem>>, vector<1x256xf32>
    %c1 = arith.constant 1 : index
    %c0_1 = arith.constant 0 : index
    %5 = vector.load %arg2[%c1, %c0_1] : memref<2x256xf32, #tpu.memory_space<vmem>>, vector<1x256xf32>
    %c16_i32_2 = arith.constant 16 : i32
    %6 = arith.cmpi sge, %0, %c16_i32_2 : i32
    %c16_i32_3 = arith.constant 16 : i32
    %c0_i32 = arith.constant 0 : i32
    %7 = arith.select %6, %c16_i32_3, %c0_i32 : i32
    %8 = vector.broadcast %7 : i32 to vector<16x1xi32>
    %9 = arith.subi %3, %8 : vector<16x1xi32>
    %c1_i32 = arith.constant 1 : i32
    %10 = vector.broadcast %c1_i32 : i32 to vector<16x1xi32>
    %11 = arith.shrsi %9, %10 : vector<16x1xi32>
    %12 = arith.sitofp %11 : vector<16x1xi32> to vector<16x1xf32>
    %cst = arith.constant 1.250000e-01 : f32
    %13 = vector.broadcast %cst : f32 to vector<16x1xf32>
    %14 = arith.mulf %12, %13 : vector<16x1xf32>
    %cst_4 = arith.constant -9.21034049 : f32
    %15 = vector.broadcast %cst_4 : f32 to vector<16x1xf32>
    %16 = arith.mulf %14, %15 : vector<16x1xf32>
    %17 = math.exp %16 : vector<16x1xf32>
    %c1_i32_5 = arith.constant 1 : i32
    %18 = vector.broadcast %c1_i32_5 : i32 to vector<16x1xi32>
    %19 = arith.andi %9, %18 : vector<16x1xi32>
    %20 = arith.sitofp %19 : vector<16x1xi32> to vector<16x1xf32>
    %cst_6 = arith.constant 1.57079637 : f32
    %21 = vector.broadcast %cst_6 : f32 to vector<16x1xf32>
    %22 = arith.mulf %20, %21 : vector<16x1xf32>
    %23 = arith.select %6, %5, %4 : vector<1x256xf32>
    %24 = vector.broadcast %23 : vector<1x256xf32> to vector<16x256xf32>
    %25 = vector.broadcast %17 : vector<16x1xf32> to vector<16x256xf32>
    %26 = arith.mulf %24, %25 : vector<16x256xf32>
    %27 = vector.broadcast %22 : vector<16x1xf32> to vector<16x256xf32>
    %28 = arith.addf %26, %27 : vector<16x256xf32>
    %29 = math.sin %28 : vector<16x256xf32>
    %c0_7 = arith.constant 0 : index
    %c0_8 = arith.constant 0 : index
    %30 = vector.load %arg3[%c0_7, %c0_8] : memref<16x256xf32, #tpu.memory_space<vmem>>, vector<16x256xf32>
    tpu.vector_store %arg3[%c0_7, %c0_8], %29 {strides = array<i32>} : memref<16x256xf32, #tpu.memory_space<vmem>>, vector<16x256xf32>,
    return
  }
  func.func @transform_0(%arg0: i32, %arg1: i32) -> (i32, i32) {
    %c0_i32 = arith.constant 0 : i32
    %c0_i32_0 = arith.constant 0 : i32
    return %c0_i32, %arg1 : i32, i32
  }
  func.func @transform_1(%arg0: i32, %arg1: i32) -> (i32, i32) {
    %c0_i32 = arith.constant 0 : i32
    return %arg0, %arg1 : i32, i32
  }
}

</mosaic_0001>

<bundles_post_ra>
// kernel: tpu_custom_call.1
= control target key start
LH: loop header
LB: loop body
LE: loop exit
PB: predicated region body
PF: predicated region fallthrough
CT: control target
= control target key end

     0   :  { %6 = vsyncpa [#allocation3], 0  ;;  %s1428_s0 = inlined_call_operand.hbm [shape: f32[2,256], index: 0, kind: input, shape index: {}]   ;;  %s1429_s1 = inlined_call_operand.hbm [shape: f32[32,256], index: 1, kind: output, shape index: {}]  }
   0x1   :  { %7 = vsyncpa [#allocation4], 0 }
   0x2   :  { %9 = vsyncpa [#allocation4 + $0x1], 0  ;;  %s975_s6 = smov 0   ;;  %s977_s7 = smov 0  }
   0x3   :  { %s979_s8 = smov 0   ;;  %s981_s9 = smov 0  }
   0x4   :  { %s983_s10 = smov 0   ;;  %s985_s11 = smov 0  }
   0x5 LB: > { %s701_s12 = sadd.s32 4294967295, %s953_s11   ;;  %s702_s13 = sadd.s32 4294967294, %s953_s11   ;;  %s953_s11 = sphi %s985_s11, %s15_s11   ;;  %s949_s10 = sphi %s983_s10, %s1452_s10   ;;  %s945_s9 = sphi %s981_s9, %s1451_s9   ;;  %s941_s8 = sphi %s979_s8, %s1450_s8   ;;  %s937_s7 = sphi %s977_s7, %s1449_s7   ;;  %s933_s6 = sphi %s975_s6, %s1448_s6  }
   0x6   : > { %s27_s14 = sadd.s32 1, %s949_s10  ;;  %s62_s15 = sadd.s32 1, %s941_s8 }
   0x7   : > { %p29_p0 = scmp.ge.s32.totalorder %s27_s14, 2  ;;  %p72_p1 = scmp.ne.s32.totalorder %s941_s8, %s937_s7 }
   0x8   : > { %p73_p2 = scmp.eq.s32.totalorder %s701_s12, 1  ;;  %p78_p3 = scmp.ne.s32.totalorder %s937_s7, %s933_s6 }
   0x9   : > { %s1454_s14 = smov (%p29_p0, %s27_s14), 0  ;;  %p79_p5 = scmp.eq.s32.totalorder %s702_s13, 1 }
   0xa   : > { %p1015_p4 = por %p73_p2, %p72_p1  ;;  %s57_s17 = ssub.s32 %s949_s10, %s1454_s14 }
   0xb   : > { %p703_p6 = scmp.ge.s32.totalorder %s953_s11, 1  ;;  %p60_p7 = scmp.eq.s32.totalorder %s57_s17, 0 }
   0xc   : > { %s1434_s16 = scalar_select %p1015_p4, 1, 0 }
   0xd   : > { %p1022_p8 = por %p79_p5, %p78_p3  ;;  %p86_p9 = scmp.lt.s32.totalorder %s953_s11, 3 }
   0xe   : > { %s1028_s19 = scalar_select %p60_p7, %s941_s8, %s62_s15  }
   0xf   : > { %s1435_s18 = scalar_select %p1022_p8, 1, 0 }
  0x10   : > { %p1030_p10 = pnand %p703_p6, %p86_p9  ;;  %p1034_p11 = scmp.eq.s32.totalorder %s701_s12, 0 }
  0x11   : > { %s955_s22 = smov [#allocation2]   ;;  %s843_s27 = scalar_lea.hbm %s1428_s0, 64 }
  0x12   : > { %s1436_s20 = scalar_select %p1030_p10, 1, 0 }
  0x13   : > { %s1437_s21 = scalar_select %p1034_p11, 1, 0 }
  0x14   : > { %p755_p12 = pneg %p1030_p10  ;;  %s102_s23 = sshll.u32 %s955_s22, 4  ;;  %s103_s23 = int_to_ptr.vmem [resolvable:$true] %s102_s23 }
  0x15   : > { %p844_p0 = scmp.ne.s32.totalorder %s1428_s0, %s843_s27  ;;  %p850_p5 = scmp.lt.u32.totalorder %s843_s27, %s1428_s0 }
  0x16   : > { %p1042_p13 = pnand %p1034_p11, %p755_p12 }
  0x18   : > { %p845_p1 = pneg %p1042_p13 }
  0x1a   : > { %p846_p2 = pnand %p845_p1, %p844_p0 }
  0x1c   : > { %p847_p3 = pneg %p846_p2 }
  0x1e   : > { %p852_p6 = pnand %p850_p5, %p847_p3 }
  0x20   : > { %855 = shalt.err (!%p852_p6)
}
  0x21   : > { %s856_s3 = scalar_lea.vmem %s103_s23, 64  ;;  %p864_p8 = scmp.lt.s32.totalorder %s103_s23, %s103_s23 }
  0x22   : > { %p857_p7 = scmp.ne.s32.totalorder %s103_s23, %s856_s3  ;;  %p865_p4 = scmp.lt.s32.totalorder %s856_s3, %s856_s3 }
  0x24   : > { %p859_p9 = pnand %p857_p7, %p845_p1  ;;  %p866_p11 = por %p865_p4, %p864_p8 }
  0x26   : > { %p860_p12 = pneg %p859_p9 }
  0x28   : > { %p867_p10 = pnand %p866_p11, %p860_p12 }
  0x2a   : > { %870 = shalt.err (!%p867_p10)
}
  0x2b   : > { %758 = dma.hbm_to_vmem [thread:$0]  (!%p1042_p13), %s1428_s0, 64, %s103_s23, [#allocation3]  }
  0x2c   : > { %p1439_p0 = scmp.ne.s32.totalorder %s1436_s20, 0 }
  0x2d   : > { %p1440_p2 = scmp.ne.s32.totalorder (!%p1439_p0), %s1437_s21, 0 }
  0x2e   : > { %115 = sbr.rel (%p1439_p0) target bundleno = 236 (0xec), region = 24 }
  0x35   : > { %924 = dma.done.wait (%p1440_p2), [#allocation3], 64  }
  0x36   : > { %926 = vsyncadd (%p1440_p2), [#allocation3], 4294967232  ;;  %s708_s12 = sshll.u32 %s945_s9, 4  ;;  %v134_v0 = vlaneseq  ;;  %v140_v19 = vld [vmem:[#allocation2] ss:$2 sm:$0x3] }
  0x37   : > { %v137_v1 = vstv %s708_s12  ;;  %p1069_p4 = scmp.ge.s32.totalorder %s708_s12, 16  ;;  %v142_v21 = vld [vmem:[#allocation2 + $0x1] ss:$2 sm:$0x3]  ;;  %s127_s20 = sand.u32 1, %s937_s7  }
  0x38   : > { %v135_v2 = vshrl.u32 %v134_v0, 7  ;;  %s707_s21 = sshll.u32 %s127_s20, 5  ;;  %s732_s23 = sshll.u32 %s945_s9, 9 }
  0x39   : > { %s144_s15 = scalar_select %p1069_p4, 16, 0 }
  0x3a   : > { %v136_v3 = vadd.s32 8, %v135_v2  ;;  %v138_v4 = vadd.s32 %v137_v1, %v135_v2  ;;  %s166_s17 = scalar_select %p1069_p4, 1, 0  ;;  %v173_v24 = vsub.s32 0, %v135_v2  ;;  %v177_v25 = vsub.s32 1, %v135_v2 }
  0x3b   : > { %v145_v5 = vstv %s144_s15  ;;  %s1349_s22 = scalar_lea.vmem [#allocation5], %s707_s21  ;;  %s1375_s27 = scalar_lea.hbm %s1429_s1, %s732_s23 }
  0x3c   : > { %v139_v6 = vadd.s32 %v137_v1, %v136_v3  ;;  %v146_v7 = vsub.s32 %v138_v4, %v145_v5  ;;  %v167_v18 = vstv %s166_s17  ;;  %s626_s24 = sshll.u32 %s1349_s22, 4  ;;  %s1382_s9 = scalar_lea.sflag [#allocation4], %s127_s20  ;;  %s1377_s24 = int_to_ptr.vmem [resolvable:$true] %s626_s24 }
  0x3d   : > { %vm168_vm0 = vcmp.eq.s32.totalorder %v167_v18, 1  ;;  %s871_s28 = scalar_lea.vmem %s1377_s24, 512  ;;  %p1446_p10 = scmp.ne.s32.totalorder %s1434_s16, 0 }
  0x3e   : > { %v147_v8 = vsub.s32 %v139_v6, %v145_v5  ;;  %v148_v9 = vshra.s32 %v146_v7, 1  ;;  %v160_v22 = vand.u32 1, %v146_v7  ;;  %v169_v26 = vsel %vm168_vm0, %v142_v21, %v140_v19  ;;  %p872_p8 = scmp.ne.s32.totalorder %s1377_s24, %s871_s28  ;;  %s962_s29 = smov [#allocation5]  }
  0x3f   : > { %v174_v29 = vrot.slane %v169_v26, %v173_v24  ;;  %v178_v30 = vrot.slane %v169_v26, %v177_v25  ;;  %v956_v7 = vmov 683565275   ;;  %s875_s30 = sshll.u32 %s962_s29, 4  ;;  %s876_s30 = int_to_ptr.vmem [resolvable:$false] %s875_s30 }
  0x40   : > { %v149_v10 = vshra.s32 %v147_v8, 1  ;;  %v150_v11 = vcvt.s32.f32 %v148_v9  ;;  %v161_v23 = vand.u32 1, %v147_v8  ;;  %v162_v27 = vcvt.s32.f32 %v160_v22  ;;  %p873_p11 = pnand %p872_p8, %p1446_p10  ;;  %s877_s2 = scalar_lea.vmem %s876_s30, 1024 }
  0x41   : > { %v957_v9 = vmov 2475754826   ;;  %p878_p1 = scmp.lt.s32.totalorder %s1377_s24, %s876_s30  ;;  %p879_p3 = scmp.lt.s32.totalorder %s877_s2, %s871_s28 }
  0x42   : > { %v151_v12 = vcvt.s32.f32 %v149_v10  ;;  %v152_v13 = vmul.f32 0.125, %v150_v11  ;;  %v163_v28 = vcvt.s32.f32 %v161_v23  ;;  %v164_v31 = vmul.f32 1.5707964, %v162_v27  ;;  %p874_p13 = pneg %p873_p11 }
  0x43   : > { %v958_v11 = vmov 2131351028   ;;  %v961_v23 = vmov 1326507024   ;;  %p880_p5 = por %p879_p3, %p878_p1 }
  0x44   : > { %v153_v14 = vmul.f32 0.125, %v151_v12  ;;  %v154_v15 = vmul.f32 -9.2103405, %v152_v13  ;;  %v165_v33 = vmul.f32 1.5707964, %v163_v28 }
  0x45   : > { %v959_v13 = vmov 2102212464   ;;  %p881_p6 = pnand %p880_p5, %p874_p13 }
  0x46   : > { %v155_v16 = vmul.f32 -9.2103405, %v153_v14  ;;  %v156_v17 = vmul.f32 1.442695, %v154_v15  ;;  %v960_v15 = vmov 920167782  }
  0x48   : > { %823 = vpow2.f32 %v156_v17  ;;  %v158_v20 = vmul.f32 1.442695, %v155_v16 }
  0x4a   : > { %825 = vpow2.f32 %v158_v20 }
  0x52   : > { %v824_v32 = vpop.eup %823 }
  0x53   : > { %v181_v34 = vmul.f32 %v824_v32, %v174_v29  ;;  %v182_v35 = vmul.f32 %v824_v32, %v178_v30 }
  0x54   : > { %v826_v36 = vpop.eup %825 }
  0x55   : > { %v183_v37 = vmul.f32 %v826_v36, %v174_v29  ;;  %v1077_v38 = vadd.f32 %v181_v34, %v164_v31  ;;  %v1079_v39 = vadd.f32 %v182_v35, %v164_v31  ;;  %v184_v51 = vmul.f32 %v826_v36, %v178_v30 }
  0x57   : > { %v1081_v40 = vadd.f32 %v183_v37, %v165_v33  ;;  %v189_v41 = vand.u32 2147483647, %v1077_v38  ;;  %v192_v42 = vand.u32 2139095040, %v1077_v38  ;;  %v293_v43 = vand.u32 2147483647, %v1079_v39 }
  0x58   : > { %v296_v44 = vand.u32 2139095040, %v1079_v39  ;;  %v1093_v60 = vadd.f32 %v184_v51, %v165_v33  ;;  %vm191_vm14 = vcmp.lt.s32.totalorder %v1077_v38, 0 }
  0x59   : > { %v193_v45 = vshrl.u32 %v192_v42, 23  ;;  %v196_v46 = vand.u32 8388607, %v189_v41  ;;  %v300_v48 = vand.u32 8388607, %v293_v43  ;;  %v400_v49 = vand.u32 2139095040, %v1081_v40 }
  0x5a   : > { %v297_v47 = vshrl.u32 %v296_v44, 23  ;;  %v397_v58 = vand.u32 2147483647, %v1081_v40 }
  0x5b   : > { %v709_v50 = vadd.s32 4294967169, %v193_v45  ;;  %v401_v53 = vshrl.u32 %v400_v49, 23  ;;  %v197_v54 = vor.u32 8388608, %v196_v46  ;;  %v301_v56 = vor.u32 8388608, %v300_v48 }
  0x5c   : > { %v713_v52 = vadd.s32 4294967169, %v297_v47  ;;  %v1101_v4 = vand.u32 8388607, %v397_v58 }
  0x5d   : > { %v199_v55 = vadd.s32 1, %v709_v50  ;;  %v717_v59 = vadd.s32 4294967169, %v401_v53  ;;  %v1095_v0 = vshll.u32 %v197_v54, 8  ;;  %v1097_v3 = vshll.u32 %v301_v56, 8 }
  0x5e   : > { %v303_v57 = vadd.s32 1, %v713_v52 }
  0x5f   : > { %vm200_vm1 = vcmp.gt.s32.totalorder %v199_v55, 0  ;;  %v1103_v5 = vadd.s32 1, %v717_v59 }
  0x60   : > { %v201_v61 = vsel %vm200_vm1, %v199_v55, 0  ;;  %vm304_vm2 = vcmp.gt.s32.totalorder %v303_v57, 0 }
  0x61   : > { %v202_v62 = vshrl.u32 %v201_v61, 5  ;;  %v203_v63 = vand.u32 31, %v201_v61  ;;  %v305_v1 = vsel %vm304_vm2, %v303_v57, 0  ;;  %vm408_vm7 = vcmp.gt.s32.totalorder %v1103_v5, 0 }
  0x62   : > { %v307_v2 = vand.u32 31, %v305_v1  ;;  %v1110_v17 = vshrl.u32 %v305_v1, 5 }
  0x63   : > { %v204_v6 = vsub.s32 32, %v203_v63  ;;  %v206_v8 = vshll.u32 %v956_v7, %v203_v63  ;;  %v209_v10 = vshll.u32 %v957_v9, %v203_v63  ;;  %v212_v12 = vshll.u32 %v958_v11, %v203_v63 }
  0x64   : > { %v215_v14 = vshll.u32 %v959_v13, %v203_v63  ;;  %v218_v16 = vshll.u32 %v960_v15, %v203_v63  ;;  %vm221_vm3 = vcmp.lt.s32.totalorder %v202_v62, 1  ;;  %vm222_vm4 = vcmp.lt.s32.totalorder %v202_v62, 2 }
  0x65   : > { %v205_v18 = vshrl.u32 %v956_v7, %v204_v6  ;;  %v207_v19 = vshrl.u32 %v957_v9, %v204_v6  ;;  %v210_v20 = vshrl.u32 %v958_v11, %v204_v6  ;;  %v213_v21 = vshrl.u32 %v959_v13, %v204_v6 }
  0x66   : > { %v216_v22 = vshrl.u32 %v960_v15, %v204_v6  ;;  %v219_v24 = vshrl.u32 %v961_v23, %v204_v6  ;;  %vm224_vm5 = vcmp.lt.s32.totalorder %v202_v62, 4  ;;  %v308_v28 = vsub.s32 32, %v307_v2 }
  0x67   : > { %v208_v25 = vor.u32 %v207_v19, %v206_v8  ;;  %v211_v26 = vor.u32 %v210_v20, %v209_v10  ;;  %v214_v27 = vor.u32 %v213_v21, %v212_v12  ;;  %vm223_vm6 = vcmp.lt.s32.totalorder %v202_v62, 3 }
  0x68   : > { %v217_v29 = vor.u32 %v216_v22, %v215_v14  ;;  %v220_v30 = vor.u32 %v219_v24, %v218_v16  ;;  %v310_v31 = vshll.u32 %v956_v7, %v307_v2  ;;  %v313_v44 = vshll.u32 %v957_v9, %v307_v2 }
  0x69   : > { %v225_v32 = vsel %vm221_vm3, %v205_v18, %v208_v25  ;;  %v226_v33 = vsel %vm224_vm5, %v214_v27, 2102212464  ;;  %v229_v34 = vsel %vm221_vm3, %v208_v25, %v211_v26  ;;  %v233_v35 = vsel %vm221_vm3, %v211_v26, %v214_v27 }
  0x6a   : > { %v227_v36 = vsel %vm223_vm6, %v211_v26, %v226_v33  ;;  %v230_v37 = vsel %vm224_vm5, %v217_v29, 920167782  ;;  %v234_v42 = vsel %vm224_vm5, %v220_v30, 1326507024  ;;  %v309_v47 = vshrl.u32 %v956_v7, %v308_v28 }
  0x6b   : > { %v231_v45 = vsel %vm223_vm6, %v214_v27, %v230_v37  ;;  %v235_v46 = vsel %vm223_vm6, %v217_v29, %v234_v42  ;;  %v311_v48 = vshrl.u32 %v957_v9, %v308_v28  ;;  %v228_v49 = vsel %vm222_vm4, %v225_v32, %v227_v36 }
  0x6c   : > { %v232_v50 = vsel %vm222_vm4, %v229_v34, %v231_v45  ;;  %v236_v51 = vsel %vm222_vm4, %v233_v35, %v235_v46  ;;  %v314_v52 = vshrl.u32 %v958_v11, %v308_v28  ;;  %v316_v61 = vshll.u32 %v958_v11, %v307_v2 }
  0x6d   : > { %v1131_v53 = vmul.u32.u64.low %v1095_v0, %v236_v51  ;;  %v1132_v54 = vmul.u32.u64.high %v1095_v0, %v236_v51, %v1131_v53  ;;  %v1135_v55 = vmul.u32.u64.low %v1095_v0, %v232_v50  ;;  %v1136_v56 = vmul.u32.u64.high %v1095_v0, %v232_v50, %v1135_v55 }
  0x6e   : > { %v312_v57 = vor.u32 %v311_v48, %v310_v31  ;;  %v315_v59 = vor.u32 %v314_v52, %v313_v44  ;;  %v317_v63 = vshrl.u32 %v959_v13, %v308_v28  ;;  %v319_v62 = vshll.u32 %v959_v13, %v307_v2 }
  0x6f   : > { %v320_v1 = vshrl.u32 %v960_v15, %v308_v28  ;;  %v322_v6 = vshll.u32 %v960_v15, %v307_v2  ;;  %v323_v8 = vshrl.u32 %v961_v23, %v308_v28  ;;  %v244_v10 = vmul.u32 %v1095_v0, %v228_v49 }
  0x70   : > { %v318_v12 = vor.u32 %v317_v63, %v316_v61  ;;  %vm325_vm8 = vcmp.lt.s32.totalorder %v1110_v17, 1  ;;  %vm326_vm9 = vcmp.lt.s32.totalorder %v1110_v17, 2  ;;  %vm246_vm10 = vc.u32 %v1132_v54, %v1135_v55 }
  0x71   : > { %v247_v14 = vadd.s32 1, %v1136_v56  ;;  %v321_v16 = vor.u32 %v320_v1, %v319_v62  ;;  %vm327_vm11 = vcmp.lt.s32.totalorder %v1110_v17, 3  ;;  %v324_v18 = vor.u32 %v323_v8, %v322_v6 }
  0x72   : > { %vm328_vm12 = vcmp.lt.s32.totalorder %v1110_v17, 4  ;;  %v329_v2 = vsel %vm325_vm8, %v309_v47, %v312_v57  ;;  %v333_v19 = vsel %vm325_vm8, %v312_v57, %v315_v59  ;;  %v337_v22 = vsel %vm325_vm8, %v315_v59, %v318_v12 }
  0x73   : > { %v248_v0 = vsel %vm246_vm10, %v247_v14, %v1136_v56  ;;  %v330_v20 = vsel %vm328_vm12, %v318_v12, 2102212464  ;;  %v334_v21 = vsel %vm328_vm12, %v321_v16, 920167782  ;;  %v338_v27 = vsel %vm328_vm12, %v324_v18, 1326507024 }
  0x74   : > { %v249_v24 = vadd.s32 %v248_v0, %v244_v10  ;;  %v331_v25 = vsel %vm327_vm11, %v315_v59, %v330_v20  ;;  %v335_v26 = vsel %vm327_vm11, %v318_v12, %v334_v21  ;;  %v339_v30 = vsel %vm327_vm11, %v321_v16, %v338_v27 }
  0x75   : > { %v332_v28 = vsel %vm326_vm9, %v329_v2, %v331_v25  ;;  %v336_v29 = vsel %vm326_vm9, %v333_v19, %v335_v26  ;;  %v409_v31 = vsel %vm408_vm7, %v1103_v5, 0  ;;  %v340_v33 = vsel %vm326_vm9, %v337_v22, %v339_v30 }
  0x76   : > { %v250_v32 = vadd.s32 536870912, %v249_v24  ;;  %v1164_v34 = vmul.u32.u64.low %v1097_v3, %v336_v29  ;;  %v1165_v35 = vmul.u32.u64.high %v1097_v3, %v336_v29, %v1164_v34  ;;  %v504_v42 = vand.u32 2139095040, %v1093_v60 }
  0x77   : > { %v1169_v36 = vmul.u32.u64.low %v1097_v3, %v340_v33  ;;  %v1170_v37 = vmul.u32.u64.high %v1097_v3, %v340_v33, %v1169_v36  ;;  %v405_v45 = vor.u32 8388608, %v1101_v4  ;;  %v411_v46 = vand.u32 31, %v409_v31 }
  0x78   : > { %v251_v44 = vshrl.u32 %v250_v32, 30  ;;  %v348_v5 = vmul.u32 %v1097_v3, %v332_v28  ;;  %v351_v17 = vadd.s32 1, %v1165_v35  ;;  %v501_v49 = vand.u32 2147483647, %v1093_v60 }
  0x79   : > { %v412_v48 = vsub.s32 32, %v411_v46  ;;  %vm350_vm13 = vc.u32 %v1170_v37, %v1164_v34  ;;  %v505_v50 = vshrl.u32 %v504_v42, 23  ;;  %v410_v4 = vshrl.u32 %v409_v31, 5 }
  0x7a   : > { %v252_v47 = vshll.u32 %v251_v44, 30  ;;  %v352_v52 = vsel %vm350_vm13, %v351_v17, %v1165_v35  ;;  %v1183_v53 = vshll.u32 %v405_v45, 8  ;;  %v414_v56 = vshll.u32 %v956_v7, %v411_v46 }
  0x7b   : > { %v353_v3 = vadd.s32 %v352_v52, %v348_v5  ;;  %v415_v57 = vshrl.u32 %v957_v9, %v412_v48  ;;  %v417_v59 = vshll.u32 %v957_v9, %v411_v46  ;;  %v418_v63 = vshrl.u32 %v958_v11, %v412_v48 }
  0x7c   : > { %v1180_v51 = vsub.s32 %v249_v24, %v252_v47  ;;  %v420_v62 = vshll.u32 %v958_v11, %v411_v46  ;;  %v421_v1 = vshrl.u32 %v959_v13, %v412_v48  ;;  %v245_v6 = vadd.s32 %v1135_v55, %v1132_v54 }
  0x7d   : > { %v354_v8 = vadd.s32 536870912, %v353_v3  ;;  %v423_v10 = vshll.u32 %v959_v13, %v411_v46  ;;  %v721_v12 = vadd.s32 4294967169, %v505_v50  ;;  %v275_v16 = vsub.s32 4, %v251_v44 }
  0x7e   : > { %v255_v61 = vsub.s32 0, %v1180_v51  ;;  %v424_v18 = vshrl.u32 %v960_v15, %v412_v48  ;;  %vm432_vm15 = vcmp.lt.s32.totalorder %v410_v4, 4  ;;  %v413_v19 = vshrl.u32 %v956_v7, %v412_v48 }
  0x7f   : > { %v1197_v2 = vshrl.u32 %v354_v8, 30  ;;  %v426_v0 = vshll.u32 %v960_v15, %v411_v46  ;;  %v427_v20 = vshrl.u32 %v961_v23, %v412_v48  ;;  %v416_v54 = vor.u32 %v415_v57, %v414_v56 }
  0x80   : > { %v710_v14 = vmin.u32 %v255_v61, %v1180_v51  ;;  %v419_v55 = vor.u32 %v418_v63, %v417_v59  ;;  %v422_v22 = vor.u32 %v421_v1, %v420_v62  ;;  %v425_v25 = vor.u32 %v424_v18, %v423_v10 }
  0x81   : > { %v356_v24 = vshll.u32 %v1197_v2, 30  ;;  %vm429_vm0 = vcmp.lt.s32.totalorder %v410_v4, 1  ;;  %vm431_vm1 = vcmp.lt.s32.totalorder %v410_v4, 3  ;;  %v428_v27 = vor.u32 %v427_v20, %v426_v0 }
  0x82   : > { %v257_v21 = vclz %v710_v14  ;;  %v434_v28 = vsel %vm432_vm15, %v422_v22, 2102212464  ;;  %v511_v29 = vadd.s32 1, %v721_v12  ;;  %v276_v30 = vsel %vm191_vm14, %v275_v16, %v251_v44 }
  0x83   : > { %v1206_v31 = vsub.s32 %v353_v3, %v356_v24  ;;  %vm430_vm2 = vcmp.lt.s32.totalorder %v410_v4, 2  ;;  %v438_v32 = vsel %vm432_vm15, %v425_v25, 920167782  ;;  %v433_v33 = vsel %vm429_vm0, %v413_v19, %v416_v54 }
  0x84   : > { %v711_v26 = vadd.s32 4294967294, %v257_v21  ;;  %v437_v35 = vsel %vm429_vm0, %v416_v54, %v419_v55  ;;  %v439_v36 = vsel %vm431_vm1, %v422_v22, %v438_v32  ;;  %v435_v46 = vsel %vm431_vm1, %v419_v55, %v434_v28 }
  0x85   : > { %v359_v45 = vsub.s32 0, %v1206_v31  ;;  %v441_v5 = vsel %vm429_vm0, %v419_v55, %v422_v22  ;;  %v442_v48 = vsel %vm432_vm15, %v428_v27, 1326507024  ;;  %vm1219_vm4 = vcmp.le.f32.partialorder %v189_v41, 0.7853982 }
  0x86   : > { %vm712_vm3 = vcmp.lt.s32.totalorder %v711_v26, 0  ;;  %v440_v3 = vsel %vm430_vm2, %v437_v35, %v439_v36  ;;  %v443_v56 = vsel %vm431_vm1, %v425_v25, %v442_v48  ;;  %vm512_vm5 = vcmp.gt.s32.totalorder %v511_v29, 0 }
  0x87   : > { %v260_v42 = vsel %vm712_vm3, 0, %v711_v26  ;;  %v714_v52 = vmin.u32 %v359_v45, %v1206_v31  ;;  %v444_v61 = vsel %vm430_vm2, %v441_v5, %v443_v56  ;;  %v436_v41 = vsel %vm430_vm2, %v433_v33, %v435_v46 }
  0x88   : > { %v261_v44 = vsub.s32 32, %v260_v42  ;;  %v262_v47 = vshll.u32 %v1180_v51, %v260_v42  ;;  %v265_v17 = vsub.s32 4294967266, %v260_v42  ;;  %v278_v51 = vsel %vm1219_vm4, 0, %v276_v30 }
  0x89   : > { %v361_v63 = vclz %v714_v52  ;;  %v1232_v62 = vand.u32 8388607, %v501_v49  ;;  %v1235_v10 = vmul.u32.u64.low %v1183_v53, %v444_v61  ;;  %v1236_v12 = vmul.u32.u64.high %v1183_v53, %v444_v61, %v1235_v10 }
  0x8a   : > { %v263_v57 = vshrl.u32 %v245_v6, %v261_v44  ;;  %v266_v59 = vadd.s32 127, %v265_v17  ;;  %v1239_v14 = vmul.u32.u64.low %v1183_v53, %v440_v3  ;;  %v1240_v16 = vmul.u32.u64.high %v1183_v53, %v440_v3, %v1239_v14 }
  0x8b   : > { %v715_v6 = vadd.s32 4294967294, %v361_v63  ;;  %v513_v18 = vsel %vm512_vm5, %v511_v29, 0  ;;  %v1243_v20 = vadd.s32 3, %v278_v51  ;;  %v349_v21 = vadd.s32 %v1164_v34, %v1170_v37 }
  0x8c   : > { %v264_v1 = vor.u32 %v263_v57, %v262_v47  ;;  %v267_v8 = vshll.u32 %v266_v59, 23  ;;  %v515_v0 = vand.u32 31, %v513_v18  ;;  %v509_v54 = vor.u32 8388608, %v1232_v62 }
  0x8d   : > { %vm716_vm6 = vcmp.lt.s32.totalorder %v715_v6, 0  ;;  %v452_v24 = vmul.u32 %v1183_v53, %v436_v41  ;;  %vm454_vm7 = vc.u32 %v1236_v12, %v1239_v14  ;;  %vm295_vm8 = vcmp.lt.s32.totalorder %v1079_v39, 0 }
  0x8e   : > { %v268_v19 = vor.u32 4788187, %v267_v8  ;;  %v271_v4 = vcvt.s32.f32 %v264_v1  ;;  %v364_v22 = vsel %vm716_vm6, 0, %v715_v6  ;;  %v455_v28 = vadd.s32 1, %v1240_v16 }
  0x8f   : > { %v365_v25 = vsub.s32 32, %v364_v22  ;;  %v366_v26 = vshll.u32 %v1206_v31, %v364_v22  ;;  %v369_v27 = vsub.s32 4294967266, %v364_v22  ;;  %v379_v34 = vsub.s32 4, %v1197_v2 }
  0x90   : > { %v269_v55 = vand.u32 2147483647, %v268_v19  ;;  %v1255_v37 = vshrl.u32 %v513_v18, 5  ;;  %v516_v30 = vsub.s32 32, %v515_v0  ;;  %v456_v53 = vsel %vm454_vm7, %v455_v28, %v1240_v16 }
  0x91   : > { %v367_v32 = vshrl.u32 %v349_v21, %v365_v25  ;;  %v370_v33 = vadd.s32 127, %v369_v27  ;;  %v518_v35 = vshll.u32 %v956_v7, %v515_v0  ;;  %v457_v42 = vadd.s32 %v456_v53, %v452_v24 }
  0x92   : > { %v272_v29 = vmul.f32 %v271_v4, %v269_v55  ;;  %v519_v45 = vshrl.u32 %v957_v9, %v516_v30  ;;  %v521_v31 = vshll.u32 %v957_v9, %v515_v0  ;;  %vm1263_vm9 = vcmp.le.f32.partialorder %v293_v43, 0.7853982 }
  0x93   : > { %v368_v5 = vor.u32 %v367_v32, %v366_v26  ;;  %v371_v44 = vshll.u32 %v370_v33, 23  ;;  %v522_v47 = vshrl.u32 %v958_v11, %v516_v30  ;;  %v524_v17 = vshll.u32 %v958_v11, %v515_v0 }
  0x94   : > { %v273_v36 = vxor.u32 2147483648, %v272_v29  ;;  %v458_v52 = vadd.s32 536870912, %v457_v42  ;;  %v525_v3 = vshrl.u32 %v959_v13, %v516_v30  ;;  %v527_v9 = vshll.u32 %v959_v13, %v515_v0 }
  0x95   : > { %v372_v56 = vor.u32 4788187, %v371_v44  ;;  %v375_v57 = vcvt.s32.f32 %v368_v5  ;;  %v520_v59 = vor.u32 %v519_v45, %v518_v35  ;;  %v523_v51 = vor.u32 %v522_v47, %v521_v31 }
  0x96   : > { %v274_v48 = vsel %vm191_vm14, %v273_v36, %v272_v29  ;;  %v1276_v61 = vshrl.u32 %v458_v52, 30  ;;  %v528_v11 = vshrl.u32 %v960_v15, %v516_v30  ;;  %v530_v41 = vshll.u32 %v960_v15, %v515_v0 }
  0x97   : > { %v277_v43 = vsel %vm1219_vm4, %v1077_v38, %v274_v48  ;;  %v373_v63 = vand.u32 2147483647, %v372_v56  ;;  %v531_v62 = vshrl.u32 %v961_v23, %v516_v30  ;;  %v380_v13 = vsel %vm295_vm8, %v379_v34, %v1197_v2 }
  0x98   : > { %827 = vcosq.f32 %v277_v43  ;;  %v460_v50 = vshll.u32 %v1276_v61, 30  ;;  %v529_v1 = vor.u32 %v528_v11, %v527_v9  ;;  %vm533_vm10 = vcmp.lt.s32.totalorder %v1255_v37, 1 }
  0x99   : > { %829 = vsinq.f32 %v277_v43  ;;  %v376_v8 = vmul.f32 %v375_v57, %v373_v63  ;;  %v517_v10 = vshrl.u32 %v956_v7, %v516_v30  ;;  %v526_v6 = vor.u32 %v525_v3, %v524_v17 }
  0x9a   : > { %v1287_v16 = vshll.u32 %v509_v54, 8  ;;  %v1289_v18 = vsub.s32 %v457_v42, %v460_v50  ;;  %v532_v15 = vor.u32 %v531_v62, %v530_v41  ;;  %vm535_vm11 = vcmp.lt.s32.totalorder %v1255_v37, 3 }
  0x9b   : > { %vm536_vm12 = vcmp.lt.s32.totalorder %v1255_v37, 4  ;;  %v377_v23 = vxor.u32 2147483648, %v376_v8  ;;  %vm534_vm13 = vcmp.lt.s32.totalorder %v1255_v37, 2  ;;  %v541_v7 = vsel %vm533_vm10, %v520_v59, %v523_v51 }
  0x9c   : > { %v538_v2 = vsel %vm536_vm12, %v526_v6, 2102212464  ;;  %v283_v19 = vand.u32 3, %v1243_v20  ;;  %v382_v4 = vsel %vm1263_vm9, 0, %v380_v13  ;;  %v463_v0 = vsub.s32 0, %v1289_v18 }
  0x9d   : > { %v542_v21 = vsel %vm536_vm12, %v529_v1, 920167782  ;;  %v378_v54 = vsel %vm295_vm8, %v377_v23, %v376_v8  ;;  %v537_v55 = vsel %vm533_vm10, %v517_v10, %v520_v59  ;;  %v539_v22 = vsel %vm535_vm11, %v523_v51, %v538_v2 }
  0x9e   : > { %v543_v20 = vsel %vm535_vm11, %v526_v6, %v542_v21  ;;  %v381_v24 = vsel %vm1263_vm9, %v1079_v39, %v378_v54  ;;  %v718_v25 = vmin.u32 %v463_v0, %v1289_v18  ;;  %v545_v27 = vsel %vm533_vm10, %v523_v51, %v526_v6 }
  0x9f   : > { %v544_v26 = vsel %vm534_vm13, %v541_v7, %v543_v20  ;;  %831 = vcosq.f32 %v381_v24  ;;  %v546_v28 = vsel %vm536_vm12, %v532_v15, 1326507024  ;;  %vm284_vm14 = vcmp.lt.s32.totalorder %v283_v19, 2 }
  0xa0   : > { %v1324_v29 = vmul.u32.u64.low %v1287_v16, %v544_v26  ;;  %v1325_v34 = vmul.u32.u64.high %v1287_v16, %v544_v26, %v1324_v29  ;;  %vm288_vm15 = vcmp.eq.s32.totalorder %v283_v19, 2  ;;  %833 = vsinq.f32 %v381_v24 }
  0xa1   : > { %v465_v32 = vclz %v718_v25  ;;  %vm285_vm0 = vcmp.eq.s32.totalorder %v283_v19, 0  ;;  %v386_v35 = vadd.s32 3, %v382_v4  ;;  %v547_v36 = vsel %vm535_vm11, %v529_v1, %v546_v28 }
  0xa2   : > { %v828_v30 = vpop.eup %827  ;;  %v540_v31 = vsel %vm534_vm13, %v537_v55, %v539_v22  ;;  %v548_v46 = vsel %vm534_vm13, %v545_v27, %v547_v36  ;;  %vm281_vm1 = vweird.f32 %v1077_v38  ;;  %v453_v48 = vadd.s32 %v1239_v14, %v1236_v12 }
  0xa3   : > { %v830_v33 = vpop.eup %829  ;;  %v289_v53 = vxor.u32 2147483648, %v828_v30  ;;  %v719_v45 = vadd.s32 4294967294, %v465_v32  ;;  %v1338_v44 = vmul.u32.u64.low %v1287_v16, %v548_v46  ;;  %v1339_v47 = vmul.u32.u64.high %v1287_v16, %v548_v46, %v1338_v44 }
  0xa4   : > { %v286_v42 = vxor.u32 2147483648, %v830_v33  ;;  %v559_v52 = vadd.s32 1, %v1325_v34  ;;  %v387_v9 = vand.u32 3, %v386_v35  ;;  %v556_v37 = vmul.u32 %v1287_v16, %v540_v31 }
  0xa5   : > { %v290_v5 = vsel %vm288_vm15, %v289_v53, %v830_v33  ;;  %vm720_vm2 = vcmp.lt.s32.totalorder %v719_v45, 0  ;;  %vm558_vm3 = vc.u32 %v1339_v47, %v1324_v29  ;;  %vm385_vm7 = vweird.f32 %v1079_v39 }
  0xa6   : > { %v287_v17 = vsel %vm285_vm0, %v828_v30, %v286_v42  ;;  %v468_v43 = vsel %vm720_vm2, 0, %v719_v45  ;;  %v560_v51 = vsel %vm558_vm3, %v559_v52, %v1325_v34  ;;  %vm392_vm4 = vcmp.eq.s32.totalorder %v387_v9, 2 }
  0xa7   : > { %v291_v3 = vsel %vm284_vm14, %v287_v17, %v290_v5  ;;  %v469_v38 = vsub.s32 32, %v468_v43  ;;  %v470_v57 = vshll.u32 %v1289_v18, %v468_v43  ;;  %v473_v59 = vsub.s32 4294967266, %v468_v43 }
  0xa8   : > { %v292_v56 = vsel %vm281_vm1, nan, %v291_v3  ;;  %v561_v63 = vadd.s32 %v560_v51, %v556_v37  ;;  %vm389_vm5 = vcmp.eq.s32.totalorder %v387_v9, 0  ;;  %vm388_vm6 = vcmp.lt.s32.totalorder %v387_v9, 2 }
  0xa9   : > { %605 = vst [vmem:[%s1349_s22] sm:$0xff] %v292_v56  ;;  %v471_v12 = vshrl.u32 %v453_v48, %v469_v38  ;;  %v474_v14 = vadd.s32 127, %v473_v59  ;;  %v832_v11 = vpop.eup %831  ;;  %v483_v7 = vsub.s32 4, %v1276_v61  ;;  %vm399_vm8 = vcmp.lt.s32.totalorder %v1081_v40, 0 }
  0xaa   : > { %v834_v41 = vpop.eup %833  ;;  %v393_v62 = vxor.u32 2147483648, %v832_v11  ;;  %v562_v8 = vadd.s32 536870912, %v561_v63  ;;  %vm398_vm9 = vcmp.le.f32.partialorder %v397_v58, 0.7853982  ;;  %v557_v34 = vadd.s32 %v1324_v29, %v1339_v47 }
  0xab   : > { %v472_v13 = vor.u32 %v471_v12, %v470_v57  ;;  %v475_v50 = vshll.u32 %v474_v14, 23  ;;  %v390_v1 = vxor.u32 2147483648, %v834_v41  ;;  %v484_v54 = vsel %vm399_vm8, %v483_v7, %v1276_v61 }
  0xac   : > { %v394_v10 = vsel %vm392_vm4, %v393_v62, %v834_v41  ;;  %v563_v15 = vshrl.u32 %v562_v8, 30  ;;  %v486_v24 = vsel %vm398_vm9, 0, %v484_v54  ;;  %vm489_vm14 = vweird.f32 %v1081_v40 }
  0xad   : > { %v476_v6 = vor.u32 4788187, %v475_v50  ;;  %v479_v16 = vcvt.s32.f32 %v472_v13  ;;  %v391_v18 = vsel %vm389_vm5, %v832_v11, %v390_v1  ;;  %v490_v27 = vadd.s32 3, %v486_v24 }
  0xae   : > { %v395_v23 = vsel %vm388_vm6, %v391_v18, %v394_v10  ;;  %v564_v4 = vshll.u32 %v563_v15, 30  ;;  %v587_v3 = vsub.s32 4, %v563_v15  ;;  %vm503_vm15 = vcmp.lt.s32.totalorder %v1093_v60, 0 }
  0xaf   : > { %v477_v2 = vand.u32 2147483647, %v476_v6  ;;  %v396_v19 = vsel %vm385_vm7, nan, %v395_v23  ;;  %v491_v30 = vand.u32 3, %v490_v27  ;;  %vm502_vm0 = vcmp.le.f32.partialorder %v501_v49, 0.7853982 }
  0xb0   : > { %606 = vst [vmem:[%s1349_s22 + $0x8] sm:$0xff] %v396_v19  ;;  %v565_v21 = vsub.s32 %v561_v63, %v564_v4  ;;  %v588_v56 = vsel %vm503_vm15, %v587_v3, %v563_v15  ;;  %vm593_vm4 = vweird.f32 %v1093_v60 }
  0xb1   : > { %v480_v0 = vmul.f32 %v479_v16, %v477_v2  ;;  %vm496_vm11 = vcmp.eq.s32.totalorder %v491_v30, 2  ;;  %vm493_vm12 = vcmp.eq.s32.totalorder %v491_v30, 0  ;;  %vm492_vm13 = vcmp.lt.s32.totalorder %v491_v30, 2 }
  0xb2   : > { %v567_v55 = vsub.s32 0, %v565_v21  ;;  %v590_v57 = vsel %vm502_vm0, 0, %v588_v56 }
  0xb3   : > { %v481_v39 = vxor.u32 2147483648, %v480_v0  ;;  %v594_v59 = vadd.s32 3, %v590_v57 }
  0xb4   : > { %v722_v25 = vmin.u32 %v567_v55, %v565_v21 }
  0xb5   : > { %v482_v22 = vsel %vm399_vm8, %v481_v39, %v480_v0  ;;  %v595_v12 = vand.u32 3, %v594_v59 }
  0xb6   : > { %v485_v20 = vsel %vm398_vm9, %v1081_v40, %v482_v22  ;;  %v569_v26 = vclz %v722_v25 }
  0xb7   : > { %835 = vcosq.f32 %v485_v20  ;;  %vm600_vm1 = vcmp.eq.s32.totalorder %v595_v12, 2  ;;  %vm597_vm2 = vcmp.eq.s32.totalorder %v595_v12, 0  ;;  %vm596_vm3 = vcmp.lt.s32.totalorder %v595_v12, 2 }
  0xb8   : > { %837 = vsinq.f32 %v485_v20  ;;  %v723_v28 = vadd.s32 4294967294, %v569_v26 }
  0xba   : > { %vm724_vm10 = vcmp.lt.s32.totalorder %v723_v28, 0 }
  0xbb   : > { %v572_v58 = vsel %vm724_vm10, 0, %v723_v28 }
  0xbc   : > { %v573_v32 = vsub.s32 32, %v572_v58  ;;  %v574_v33 = vshll.u32 %v565_v21, %v572_v58  ;;  %v577_v61 = vsub.s32 4294967266, %v572_v58 }
  0xbe   : > { %v575_v53 = vshrl.u32 %v557_v34, %v573_v32  ;;  %v578_v35 = vadd.s32 127, %v577_v61 }
  0xc0   : > { %v576_v31 = vor.u32 %v575_v53, %v574_v33  ;;  %v579_v46 = vshll.u32 %v578_v35, 23 }
  0xc1   : > { %v836_v36 = vpop.eup %835 }
  0xc2   : > { %v838_v42 = vpop.eup %837  ;;  %v497_v45 = vxor.u32 2147483648, %v836_v36  ;;  %v580_v44 = vor.u32 4788187, %v579_v46  ;;  %v583_v47 = vcvt.s32.f32 %v576_v31 }
  0xc3   : > { %v494_v5 = vxor.u32 2147483648, %v838_v42 }
  0xc4   : > { %v498_v29 = vsel %vm496_vm11, %v497_v45, %v838_v42  ;;  %v581_v52 = vand.u32 2147483647, %v580_v44 }
  0xc5   : > { %v495_v17 = vsel %vm493_vm12, %v836_v36, %v494_v5 }
  0xc6   : > { %v499_v48 = vsel %vm492_vm13, %v495_v17, %v498_v29  ;;  %v584_v43 = vmul.f32 %v583_v47, %v581_v52 }
  0xc7   : > { %v500_v9 = vsel %vm489_vm14, nan, %v499_v48 }
  0xc8   : > { %607 = vst [vmem:[%s1349_s22 + $0x10] sm:$0xff] %v500_v9  ;;  %v585_v37 = vxor.u32 2147483648, %v584_v43 }
  0xca   : > { %v586_v40 = vsel %vm503_vm15, %v585_v37, %v584_v43 }
  0xcb   : > { %v589_v38 = vsel %vm502_vm0, %v1093_v60, %v586_v40 }
  0xcc   : > { %839 = vcosq.f32 %v589_v38 }
  0xcd   : > { %841 = vsinq.f32 %v589_v38 }
  0xd6   : > { %v840_v14 = vpop.eup %839 }
  0xd7   : > { %v842_v51 = vpop.eup %841  ;;  %v601_v11 = vxor.u32 2147483648, %v840_v14 }
  0xd8   : > { %v598_v49 = vxor.u32 2147483648, %v842_v51 }
  0xd9   : > { %v602_v63 = vsel %vm600_vm1, %v601_v11, %v842_v51 }
  0xda   : > { %v599_v41 = vsel %vm597_vm2, %v840_v14, %v598_v49 }
  0xdb   : > { %v603_v62 = vsel %vm596_vm3, %v599_v41, %v602_v63 }
  0xdc   : > { %v604_v13 = vsel %vm593_vm4, nan, %v603_v62 }
  0xdd   : > { %608 = vst [vmem:[%s1349_s22 + $0x18] sm:$0xff] %v604_v13 }
  0xde   : > { %884 = shalt.err (!%p881_p6)
}
  0xdf   : > { %s885_s3 = scalar_lea.hbm %s1375_s27, 512  ;;  %s889_s12 = scalar_lea.hbm %s1429_s1, 1024 }
  0xe0   : > { %p886_p7 = scmp.ne.s32.totalorder %s1375_s27, %s885_s3  ;;  %p890_p0 = scmp.lt.u32.totalorder %s1375_s27, %s1429_s1 }
  0xe1   : > { %p891_p2 = scmp.lt.u32.totalorder %s889_s12, %s885_s3  ;;  %p893_p8 = scmp.lt.u32.totalorder %s885_s3, %s1375_s27 }
  0xe2   : > { %p887_p9 = pnand %p886_p7, %p1446_p10 }
  0xe3   : > { %p892_p4 = por %p891_p2, %p890_p0 }
  0xe4   : > { %p888_p12 = pneg %p887_p9 }
  0xe5   : > { %p894_p11 = por %p893_p8, %p892_p4 }
  0xe7   : > { %p895_p13 = pnand %p894_p11, %p888_p12 }
  0xe9   : > { %898 = shalt.err (!%p895_p13)
}
  0xea   : > { %s963_s17 = smov 256   ;;  %s964_s20 = smov 16  }
  0xeb   : > { %753 = dma.vmem_to_hbm [thread:$0]  (%p1446_p10), %s1377_s24, 512, %s1375_s27, %s1382_s9, %s963_s17, %s963_s17, %s964_s20  }
  0xec PF: > { %p765_p1 = scmp.ge.s32.totalorder %s953_s11, 2  ;;  %s641_s21 = sand.u32 1, %s933_s6  }
  0xed   : > { %p1447_p3 = scmp.ne.s32.totalorder %s1435_s18, 0  ;;  %s642_s22 = scalar_lea.sflag [#allocation4], %s641_s21 }
  0xef   : > { %p760_p5 = pnand %p765_p1, %p1447_p3 }
  0xf1   : > { %928 = dma.done.wait (!%p760_p5), %s642_s22, 512  }
  0xf2   : > { %930 = vsyncadd (!%p760_p5), %s642_s22, 4294966784  ;;  %s15_s11 = sadd.s32 1, %s953_s11   ;;  %s1448_s6 = smov %s937_s7 }
  0xf3   : > { %p12_p6 = scmp.ge.s32.totalorder %s15_s11, 4   ;;  %s1449_s7 = smov %s941_s8 }
  0xf4   : > { %s1450_s8 = smov %s1028_s19  ;;  %s1451_s9 = smov %s949_s10 }
  0xf5   : > { %s1452_s10 = smov %s1454_s14  ;;  %14 = sbr.rel (!%p12_p6) target bundleno = 5 (0x5), region = 63 }
  0xfc   :  { %647 = vsyncpa [#allocation3], 1 }
  0xfd   :  { %649 = vsyncpa [#allocation3 + $0x1], 1 }
  0xfe   :  { %650 = vsyncpa [#allocation4], 1 }
  0xff   :  { %652 = vsyncpa [#allocation4 + $0x1], 1 }

</bundles_post_ra>
